<compile_context>
chip_gen: v6e
topology: v6e:2x2x1
jax: 0.10.0
libtpu: 0.0.40
codegen_flags: <defaults>
</compile_context>

<pallas_src>
import functools

import jax
import jax.numpy as jnp
from jax import lax
from jax.experimental import pallas as pl
from jax.experimental.pallas import tpu as pltpu


def _ntxent_kernel(z1q_ref, z2q_ref, z1k_ref, z2k_ref, out_ref,
                   zq_ref, stat_ref, *, inv_t: float):
    # z1q/z2q : (TQ, D)  f32 row tiles of the two views (fetched once per i).
    # z1k/z2k : (TK, D)  matmul-dtype column tiles (streamed over the k axis).
    # out_ref : (TQ, 2)  per-row losses; col 0 = view-0 rows, col 1 = view-1 rows.
    # zq_ref  : (2*TQ, D) matmul-dtype scratch: rows pre-scaled by 1/T (built at k==0).
    # stat_ref: (2*TQ, 3) f32 scratch: col 0 = running max m, col 1 = running sum l,
    #           col 2 = positives (z1[r]·z2[r] / T).
    tq = z1q_ref.shape[0]
    tk = z1k_ref.shape[0]
    i = pl.program_id(0)
    k = pl.program_id(1)
    nk = pl.num_programs(1)

    @pl.when(k == 0)
    def _init():
        z1q = z1q_ref[...]
        z2q = z2q_ref[...]
        # Hoisted: concat + 1/T scale done once per row tile, reused for all k.
        zq_ref[...] = (jnp.concatenate([z1q, z2q], axis=0) * inv_t).astype(zq_ref.dtype)
        # positives: sim[r, r+B] = sim[r+B, r] = z1[r]·z2[r] / T   (exact, f32)
        pos = jnp.sum(z1q * z2q, axis=-1, keepdims=True) * inv_t            # (TQ, 1)
        stat_ref[...] = jnp.concatenate(
            [jnp.full((2 * tq, 1), -jnp.inf, jnp.float32),
             jnp.zeros((2 * tq, 1), jnp.float32),
             jnp.concatenate([pos, pos], axis=0)], axis=1)

    # One MXU matmul per view; no column-side concat copy, 1/T already folded
    # into the (resident) LHS scratch.
    zq = zq_ref[...]                                                         # (2TQ, D)
    dn = (((1,), (1,)), ((), ()))
    sim1 = lax.dot_general(zq, z1k_ref[...], dimension_numbers=dn,
                           preferred_element_type=jnp.float32)               # (2TQ, TK)
    sim2 = lax.dot_general(zq, z2k_ref[...], dimension_numbers=dn,
                           preferred_element_type=jnp.float32)               # (2TQ, TK)

    # Mask the self-similarity diagonal with -1e9, exactly like the reference.
    # Rows [0, tq) are view-0 rows (diagonal lives in sim1), rows [tq, 2tq) are
    # view-1 rows (diagonal lives in sim2); the comparison is only ever true on
    # the tiles that intersect the global diagonal.
    r_idx = lax.broadcasted_iota(jnp.int32, (2 * tq, tk), 0)
    c_idx = lax.broadcasted_iota(jnp.int32, (2 * tq, tk), 1)
    in_v0 = r_idx < tq
    row_in_view = jnp.where(in_v0, r_idx, r_idx - tq) + i * tq
    on_diag = row_in_view == (c_idx + k * tk)
    neg = jnp.float32(-1e9)
    sim1 = jnp.where(on_diag & in_v0, neg, sim1)
    sim2 = jnp.where(on_diag & jnp.logical_not(in_v0), neg, sim2)

    # Online (max-subtracted) logsumexp across the column tiles.
    m_prev = stat_ref[:, 0:1]
    l_prev = stat_ref[:, 1:2]
    tile_max = jnp.maximum(jnp.max(sim1, axis=-1, keepdims=True),
                           jnp.max(sim2, axis=-1, keepdims=True))
    m_new = jnp.maximum(m_prev, tile_max)
    alpha = jnp.exp(m_prev - m_new)
    l_new = (alpha * l_prev
             + jnp.sum(jnp.exp(sim1 - m_new), axis=-1, keepdims=True)
             + jnp.sum(jnp.exp(sim2 - m_new), axis=-1, keepdims=True))
    stat_ref[:, 0:1] = m_new
    stat_ref[:, 1:2] = l_new

    @pl.when(k == nk - 1)
    def _finalize():
        m = stat_ref[:, 0:1]
        l = stat_ref[:, 1:2]
        pos = stat_ref[:, 2:3]
        # per-row loss = -log(exp(pos) / sum_j exp(sim_j)) = logsumexp - pos
        loss_rows = m + jnp.log(l) - pos                                     # (2TQ, 1)
        out_ref[...] = jnp.concatenate([loss_rows[:tq], loss_rows[tq:]], axis=1)


def _pick_tile(n: int, target: int) -> int:
    """Largest tile <= target that divides n, preferring lane/MXU-friendly
    alignment (multiples of 128, then 64, then 8); falls back to the full dim."""
    if n <= target:
        return n
    for align in (128, 64, 8):
        t = (min(target, n) // align) * align
        while t >= align:
            if n % t == 0:
                return t
            t -= align
    return n


def ntxent_loss(z1: jax.Array, z2: jax.Array, temperature: float = 0.5,
                *, row_tile: int = 256, col_tile: int = 256,
                matmul_dtype=jnp.bfloat16,
                vmem_limit_bytes: int = 48 * 1024 * 1024) -> jax.Array:
    """SimCLR NT-Xent loss.  On v5e/v6e (128 MiB VMEM) larger row_tile (512)
    and vmem_limit_bytes (~64-96 MiB) cut HBM re-streaming for very large D."""
    assert z1.shape == z2.shape and z1.ndim == 2
    B, D = z1.shape
    z1r = z1.astype(jnp.float32)              # row tiles: f32 (exact positives)
    z2r = z2.astype(jnp.float32)
    z1c = z1r.astype(matmul_dtype)            # column operands streamed every step
    z2c = z2r.astype(matmul_dtype)

    tq = _pick_tile(B, row_tile)
    # Give both TensorCores work on v7x (2 TCs): prefer >= 2 row tiles when the
    # batch allows it (the extra column re-streaming is negligible at these B).
    if B // tq < 2 and B >= 16:
        half = _pick_tile(B, B // 2)
        if half < B:
            tq = half
    tk = _pick_tile(B, col_tile)
    grid = (B // tq, B // tk)

    row_spec = pl.BlockSpec((tq, D), lambda i, k: (i, 0))
    col_spec = pl.BlockSpec((tk, D), lambda i, k: (k, 0))

    per_row = pl.pallas_call(
        functools.partial(_ntxent_kernel, inv_t=1.0 / float(temperature)),
        out_shape=jax.ShapeDtypeStruct((B, 2), jnp.float32),
        grid_spec=pltpu.PrefetchScalarGridSpec(
            num_scalar_prefetch=0,
            grid=grid,
            in_specs=[row_spec, row_spec, col_spec, col_spec],
            out_specs=pl.BlockSpec((tq, 2), lambda i, k: (i, 0)),
            scratch_shapes=[pltpu.VMEM((2 * tq, D), matmul_dtype),
                            pltpu.VMEM((2 * tq, 3), jnp.float32)],
        ),
        compiler_params=pltpu.CompilerParams(
            dimension_semantics=("parallel", "arbitrary"),
            vmem_limit_bytes=int(vmem_limit_bytes),
        ),
    )(z1r, z2r, z1c, z2c)

    # per_row has exactly 2B entries (col 0 = view-0 rows, col 1 = view-1 rows).
    return jnp.mean(per_row)


def _ntxent_ref(z1, z2, temperature=0.5):
    # pure-JAX reference mirroring the PyTorch forward exactly
    B = z1.shape[0]
    z = jnp.concatenate([z1, z2], axis=0).astype(jnp.float32)
    n = 2 * B
    sim = jnp.matmul(z, z.T, precision=lax.Precision.HIGHEST) / temperature
    sim = jnp.where(jnp.eye(n, dtype=bool), -1e9, sim)
    l_pos = jnp.diagonal(sim, offset=B)
    r_pos = jnp.diagonal(sim, offset=-B)
    positives = jnp.concatenate([l_pos, r_pos], axis=0)[:, None]
    return -jnp.mean(jnp.log(jnp.exp(positives) /
                             jnp.exp(sim).sum(axis=1, keepdims=True)))


if __name__ == "__main__":
    T = 0.5

    def make(key, b, d):
        k1, k2 = jax.random.split(key)
        a = jax.random.normal(k1, (b, d), dtype=jnp.float32)
        c = jax.random.normal(k2, (b, d), dtype=jnp.float32)
        a = a / jnp.linalg.norm(a, axis=1, keepdims=True)
        c = c / jnp.linalg.norm(c, axis=1, keepdims=True)
        return a, c

    # 1) Small single-block case (batch=8 per view, dim=32), exact f32 MXU path.
    z1, z2 = make(jax.random.PRNGKey(0), 8, 32)
    loss = jax.block_until_ready(ntxent_loss(z1, z2, T, matmul_dtype=jnp.float32))
    ref = jax.block_until_ready(_ntxent_ref(z1, z2, T))
    assert jnp.allclose(loss, ref, atol=2e-3, rtol=2e-3), (loss, ref)

    # 2) Multi-tile grid (2 row tiles x 2 column tiles) exercising the online
    #    logsumexp carry across k and the diagonal-tile masking.
    z1b, z2b = make(jax.random.PRNGKey(1), 256, 128)
    refb = jax.block_until_ready(_ntxent_ref(z1b, z2b, T))
    loss_f32 = jax.block_until_ready(
        ntxent_loss(z1b, z2b, T, row_tile=128, col_tile=128,
                    matmul_dtype=jnp.float32))
    assert jnp.allclose(loss_f32, refb, atol=2e-3, rtol=2e-3), (loss_f32, refb)
    # Default bf16 MXU path: sims get bf16 rounding, so tolerance is loosened.
    loss_bf16 = jax.block_until_ready(
        ntxent_loss(z1b, z2b, T, row_tile=128, col_tile=128))
    assert jnp.allclose(loss_bf16, refb, atol=3e-2, rtol=3e-2), (loss_bf16, refb)

    print("KERNEL_OK")
</pallas_src>

<mosaic_0001>
module attributes {stable_mosaic.version = 11 : i64} {
  func.func @_ntxent_kernel(%arg0: i32, %arg1: i32, %arg2: memref<8x32xf32, #tpu.memory_space<vmem>>, %arg3: memref<8x32xf32, #tpu.memory_space<vmem>>, %arg4: memref<8x32xf32, #tpu.memory_space<vmem>>, %arg5: memref<8x32xf32, #tpu.memory_space<vmem>>, %arg6: memref<8x2xf32, #tpu.memory_space<vmem>>, %arg7: memref<16x32xf32, #tpu.memory_space<vmem>>, %arg8: memref<16x3xf32, #tpu.memory_space<vmem>>) attributes {dimension_semantics = [#tpu.dimension_semantics<parallel>, #tpu.dimension_semantics<arbitrary>], iteration_bounds = array<i64: 1, 1>, scalar_prefetch = 0 : i64, scratch_operands = 2 : i64, tpu.core_type = #tpu.core_type<tc>, window_params = [{transform_indices = @transform_0, window_bounds = array<i64: 8, 32>}, {transform_indices = @transform_1, window_bounds = array<i64: 8, 32>}, {transform_indices = @transform_2, window_bounds = array<i64: 8, 32>}, {transform_indices = @transform_3, window_bounds = array<i64: 8, 32>}, {transform_indices = @transform_4, window_bounds = array<i64: 8, 2>}]} {
    %c0_i32 = arith.constant 0 : i32
    %0 = arith.cmpi eq, %arg1, %c0_i32 : i32
    %1 = arith.extui %0 : i1 to i32
    %c0_i32_0 = arith.constant 0 : i32
    %2 = arith.cmpi ne, %1, %c0_i32_0 : i32
    scf.if %2 {
      %c0_26 = arith.constant 0 : index
      %c0_27 = arith.constant 0 : index
      %57 = vector.load %arg2[%c0_26, %c0_27] : memref<8x32xf32, #tpu.memory_space<vmem>>, vector<8x32xf32>
      %c0_28 = arith.constant 0 : index
      %c0_29 = arith.constant 0 : index
      %58 = vector.load %arg3[%c0_28, %c0_29] : memref<8x32xf32, #tpu.memory_space<vmem>>, vector<8x32xf32>
      %59 = tpu.concatenate %57, %58 in 0 : vector<8x32xf32>, vector<8x32xf32> -> vector<16x32xf32>
      %cst_30 = arith.constant 2.000000e+00 : f32
      %60 = vector.broadcast %cst_30 : f32 to vector<16x32xf32>
      %61 = arith.mulf %59, %60 : vector<16x32xf32>
      %c0_31 = arith.constant 0 : index
      %c0_32 = arith.constant 0 : index
      %62 = vector.load %arg7[%c0_31, %c0_32] : memref<16x32xf32, #tpu.memory_space<vmem>>, vector<16x32xf32>
      tpu.vector_store %arg7[%c0_31, %c0_32], %61 {strides = array<i32>} : memref<16x32xf32, #tpu.memory_space<vmem>>, vector<16x32xf32>,
      %63 = arith.mulf %57, %58 : vector<8x32xf32>
      %cst_33 = arith.constant dense<0.000000e+00> : vector<8xf32>
      %64 = vector.multi_reduction <add>, %63, %cst_33 [1] : vector<8x32xf32> to vector<8xf32>
      %65 = vector.shape_cast %64 : vector<8xf32> to vector<8x1xf32>
      %cst_34 = arith.constant 2.000000e+00 : f32
      %66 = vector.broadcast %cst_34 : f32 to vector<8x1xf32>
      %67 = arith.mulf %65, %66 : vector<8x1xf32>
      %cst_35 = arith.constant 0xFF800000 : f32
      %68 = vector.broadcast %cst_35 : f32 to vector<16x1xf32>
      %cst_36 = arith.constant 0.000000e+00 : f32
      %69 = vector.broadcast %cst_36 : f32 to vector<16x1xf32>
      %70 = tpu.concatenate %67, %67 in 0 : vector<8x1xf32>, vector<8x1xf32> -> vector<16x1xf32>
      %71 = tpu.concatenate %68, %69, %70 in 1 : vector<16x1xf32>, vector<16x1xf32>, vector<16x1xf32> -> vector<16x3xf32>
      %c0_37 = arith.constant 0 : index
      %c0_38 = arith.constant 0 : index
      %72 = vector.load %arg8[%c0_37, %c0_38] : memref<16x3xf32, #tpu.memory_space<vmem>>, vector<16x3xf32>
      tpu.vector_store %arg8[%c0_37, %c0_38], %71 {strides = array<i32>} : memref<16x3xf32, #tpu.memory_space<vmem>>, vector<16x3xf32>,
    } else {
    }
    %c0 = arith.constant 0 : index
    %c0_1 = arith.constant 0 : index
    %3 = vector.load %arg7[%c0, %c0_1] : memref<16x32xf32, #tpu.memory_space<vmem>>, vector<16x32xf32>
    %c0_2 = arith.constant 0 : index
    %c0_3 = arith.constant 0 : index
    %4 = vector.load %arg4[%c0_2, %c0_3] : memref<8x32xf32, #tpu.memory_space<vmem>>, vector<8x32xf32>
    %cst = arith.constant dense<0.000000e+00> : vector<16x8xf32>
    %5 = tpu.matmul %3, %4, %cst {dimension_numbers = #tpu.dot_dimension_numbers<[1], [1], [0], [0], [0, 0, 1, 0], [], []>} : vector<16x32xf32>, vector<8x32xf32>, vector<16x8xf32> -> vector<16x8xf32>
    %c0_4 = arith.constant 0 : index
    %c0_5 = arith.constant 0 : index
    %6 = vector.load %arg5[%c0_4, %c0_5] : memref<8x32xf32, #tpu.memory_space<vmem>>, vector<8x32xf32>
    %cst_6 = arith.constant dense<0.000000e+00> : vector<16x8xf32>
    %7 = tpu.matmul %3, %6, %cst_6 {dimension_numbers = #tpu.dot_dimension_numbers<[1], [1], [0], [0], [0, 0, 1, 0], [], []>} : vector<16x32xf32>, vector<8x32xf32>, vector<16x8xf32> -> vector<16x8xf32>
    %8 = tpu.iota {dimensions = array<i32: 0>} : vector<16x8xi32>
    %9 = tpu.iota {dimensions = array<i32: 1>} : vector<16x8xi32>
    %c8_i32 = arith.constant 8 : i32
    %10 = vector.broadcast %c8_i32 : i32 to vector<16x8xi32>
    %11 = arith.cmpi slt, %8, %10 : vector<16x8xi32>
    %c8_i32_7 = arith.constant 8 : i32
    %12 = vector.broadcast %c8_i32_7 : i32 to vector<16x8xi32>
    %13 = arith.subi %8, %12 : vector<16x8xi32>
    %14 = arith.select %11, %8, %13 : vector<16x8xi1>, vector<16x8xi32>
    %c8_i32_8 = arith.constant 8 : i32
    %15 = arith.muli %arg0, %c8_i32_8 : i32
    %16 = vector.broadcast %15 : i32 to vector<16x8xi32>
    %17 = arith.addi %14, %16 : vector<16x8xi32>
    %c8_i32_9 = arith.constant 8 : i32
    %18 = arith.muli %arg1, %c8_i32_9 : i32
    %19 = vector.broadcast %18 : i32 to vector<16x8xi32>
    %20 = arith.addi %9, %19 : vector<16x8xi32>
    %21 = arith.cmpi eq, %17, %20 : vector<16x8xi32>
    %22 = arith.andi %21, %11 : vector<16x8xi1>
    %cst_10 = arith.constant -1.000000e+09 : f32
    %23 = vector.broadcast %cst_10 : f32 to vector<16x8xf32>
    %24 = arith.select %22, %23, %5 : vector<16x8xi1>, vector<16x8xf32>
    %cst_11 = arith.constant dense<true> : vector<16x8xi1>
    %25 = arith.xori %11, %cst_11 : vector<16x8xi1>
    %26 = arith.andi %21, %25 : vector<16x8xi1>
    %cst_12 = arith.constant -1.000000e+09 : f32
    %27 = vector.broadcast %cst_12 : f32 to vector<16x8xf32>
    %28 = arith.select %26, %27, %7 : vector<16x8xi1>, vector<16x8xf32>
    %c0_13 = arith.constant 0 : index
    %c0_14 = arith.constant 0 : index
    %29 = vector.load %arg8[%c0_13, %c0_14] : memref<16x3xf32, #tpu.memory_space<vmem>>, vector<16x1xf32>
    %c0_15 = arith.constant 0 : index
    %c1 = arith.constant 1 : index
    %30 = vector.load %arg8[%c0_15, %c1] : memref<16x3xf32, #tpu.memory_space<vmem>>, vector<16x1xf32>
    %cst_16 = arith.constant dense<0xFF800000> : vector<16xf32>
    %31 = vector.multi_reduction <maximumf>, %24, %cst_16 [1] : vector<16x8xf32> to vector<16xf32>
    %32 = vector.shape_cast %31 : vector<16xf32> to vector<16x1xf32>
    %cst_17 = arith.constant dense<0xFF800000> : vector<16xf32>
    %33 = vector.multi_reduction <maximumf>, %28, %cst_17 [1] : vector<16x8xf32> to vector<16xf32>
    %34 = vector.shape_cast %33 : vector<16xf32> to vector<16x1xf32>
    %35 = arith.maximumf %32, %34 : vector<16x1xf32>
    %36 = arith.maximumf %29, %35 : vector<16x1xf32>
    %37 = arith.subf %29, %36 : vector<16x1xf32>
    %38 = math.exp %37 : vector<16x1xf32>
    %39 = arith.mulf %38, %30 : vector<16x1xf32>
    %40 = vector.broadcast %36 : vector<16x1xf32> to vector<16x8xf32>
    %41 = arith.subf %24, %40 : vector<16x8xf32>
    %42 = math.exp %41 : vector<16x8xf32>
    %cst_18 = arith.constant dense<0.000000e+00> : vector<16xf32>
    %43 = vector.multi_reduction <add>, %42, %cst_18 [1] : vector<16x8xf32> to vector<16xf32>
    %44 = vector.shape_cast %43 : vector<16xf32> to vector<16x1xf32>
    %45 = arith.addf %39, %44 : vector<16x1xf32>
    %46 = vector.broadcast %36 : vector<16x1xf32> to vector<16x8xf32>
    %47 = arith.subf %28, %46 : vector<16x8xf32>
    %48 = math.exp %47 : vector<16x8xf32>
    %cst_19 = arith.constant dense<0.000000e+00> : vector<16xf32>
    %49 = vector.multi_reduction <add>, %48, %cst_19 [1] : vector<16x8xf32> to vector<16xf32>
    %50 = vector.shape_cast %49 : vector<16xf32> to vector<16x1xf32>
    %51 = arith.addf %45, %50 : vector<16x1xf32>
    %c0_20 = arith.constant 0 : index
    %c0_21 = arith.constant 0 : index
    %52 = vector.load %arg8[%c0_20, %c0_21] : memref<16x3xf32, #tpu.memory_space<vmem>>, vector<16x1xf32>
    tpu.vector_store %arg8[%c0_20, %c0_21], %36 {strides = array<i32>} : memref<16x3xf32, #tpu.memory_space<vmem>>, vector<16x1xf32>,
    %c0_22 = arith.constant 0 : index
    %c1_23 = arith.constant 1 : index
    %53 = vector.load %arg8[%c0_22, %c1_23] : memref<16x3xf32, #tpu.memory_space<vmem>>, vector<16x1xf32>
    tpu.vector_store %arg8[%c0_22, %c1_23], %51 {strides = array<i32>} : memref<16x3xf32, #tpu.memory_space<vmem>>, vector<16x1xf32>,
    %c0_i32_24 = arith.constant 0 : i32
    %54 = arith.cmpi eq, %arg1, %c0_i32_24 : i32
    %55 = arith.extui %54 : i1 to i32
    %c0_i32_25 = arith.constant 0 : i32
    %56 = arith.cmpi ne, %55, %c0_i32_25 : i32
    scf.if %56 {
      %c0_26 = arith.constant 0 : index
      %c0_27 = arith.constant 0 : index
      %57 = vector.load %arg8[%c0_26, %c0_27] : memref<16x3xf32, #tpu.memory_space<vmem>>, vector<16x1xf32>
      %c0_28 = arith.constant 0 : index
      %c1_29 = arith.constant 1 : index
      %58 = vector.load %arg8[%c0_28, %c1_29] : memref<16x3xf32, #tpu.memory_space<vmem>>, vector<16x1xf32>
      %c0_30 = arith.constant 0 : index
      %c2 = arith.constant 2 : index
      %59 = vector.load %arg8[%c0_30, %c2] : memref<16x3xf32, #tpu.memory_space<vmem>>, vector<16x1xf32>
      %60 = math.log %58 : vector<16x1xf32>
      %61 = arith.addf %57, %60 : vector<16x1xf32>
      %62 = arith.subf %61, %59 : vector<16x1xf32>
      %63 = vector.extract_strided_slice %62 {offsets = [0, 0], sizes = [8, 1], strides = [1, 1]} : vector<16x1xf32> to vector<8x1xf32>
      %64 = vector.extract_strided_slice %62 {offsets = [8, 0], sizes = [8, 1], strides = [1, 1]} : vector<16x1xf32> to vector<8x1xf32>
      %65 = tpu.concatenate %63, %64 in 1 : vector<8x1xf32>, vector<8x1xf32> -> vector<8x2xf32>
      %c0_31 = arith.constant 0 : index
      %c0_32 = arith.constant 0 : index
      %66 = vector.load %arg6[%c0_31, %c0_32] : memref<8x2xf32, #tpu.memory_space<vmem>>, vector<8x2xf32>
      tpu.vector_store %arg6[%c0_31, %c0_32], %65 {strides = array<i32>} : memref<8x2xf32, #tpu.memory_space<vmem>>, vector<8x2xf32>,
    } else {
    }
    return
  }
  func.func @transform_0(%arg0: i32, %arg1: i32) -> (i32, i32) {
    %c0_i32 = arith.constant 0 : i32
    %c0_i32_0 = arith.constant 0 : i32
    return %arg0, %c0_i32 : i32, i32
  }
  func.func @transform_1(%arg0: i32, %arg1: i32) -> (i32, i32) {
    %c0_i32 = arith.constant 0 : i32
    %c0_i32_0 = arith.constant 0 : i32
    return %arg0, %c0_i32 : i32, i32
  }
  func.func @transform_2(%arg0: i32, %arg1: i32) -> (i32, i32) {
    %c0_i32 = arith.constant 0 : i32
    %c0_i32_0 = arith.constant 0 : i32
    return %arg1, %c0_i32 : i32, i32
  }
  func.func @transform_3(%arg0: i32, %arg1: i32) -> (i32, i32) {
    %c0_i32 = arith.constant 0 : i32
    %c0_i32_0 = arith.constant 0 : i32
    return %arg1, %c0_i32 : i32, i32
  }
  func.func @transform_4(%arg0: i32, %arg1: i32) -> (i32, i32) {
    %c0_i32 = arith.constant 0 : i32
    %c0_i32_0 = arith.constant 0 : i32
    return %arg0, %c0_i32 : i32, i32
  }
}

</mosaic_0001>

<bundles_post_ra>
// kernel: tpu_custom_call.1
= control target key start
LH: loop header
LB: loop body
LE: loop exit
PB: predicated region body
PF: predicated region fallthrough
CT: control target
= control target key end

     0   :  { %9 = vsyncpa [#allocation5], 0  ;;  %s636_s0 = inlined_call_operand.hbm [shape: f32[8,32], index: 0, kind: input, shape index: {}]   ;;  %s637_s1 = inlined_call_operand.hbm [shape: f32[8,32], index: 1, kind: input, shape index: {}]   ;;  %s638_s2 = inlined_call_operand.hbm [shape: f32[8,32], index: 2, kind: input, shape index: {}]   ;;  %s639_s3 = inlined_call_operand.hbm [shape: f32[8,32], index: 3, kind: input, shape index: {}]   ;;  %s640_s4 = inlined_call_operand.vmem [shape: f32[8,2], index: 4, kind: output, shape index: {}]  }
   0x1   :  { %10 = vsyncpa [#allocation7], 0 }
   0x2   :  { %11 = vsyncpa [#allocation10], 0  ;;  %s554_s15 = smov [#allocation6]   ;;  %s555_s17 = smov [#allocation4]  }
   0x3   :  { %s28_s16 = sshll.u32 %s554_s15, 4  ;;  %s18_s18 = sshll.u32 %s555_s17, 4  ;;  %s29_s16 = int_to_ptr.vmem [resolvable:$true] %s28_s16  ;;  %s19_s18 = int_to_ptr.vmem [resolvable:$true] %s18_s18 }
   0x4   :  { %s476_s19 = scalar_lea.vmem %s29_s16, 128  ;;  %p481_p1 = scmp.lt.s32.totalorder %s29_s16, %s29_s16 }
   0x5   :  { %p477_p0 = scmp.ne.s32.totalorder %s29_s16, %s476_s19  ;;  %p482_p2 = scmp.lt.s32.totalorder %s476_s19, %s476_s19 }
   0x7   :  { %p483_p3 = por %p482_p2, %p481_p1 }
   0x9   :  { %p484_p4 = pnand %p483_p3, %p477_p0 }
   0xb   :  { %487 = shalt.err (!%p484_p4)
}
   0xc   :  { %31 = dma.hbm_to_vmem [thread:$0]  %s637_s1, 128, %s29_s16, [#allocation7]  }
   0xd   :  { %s496_s22 = scalar_lea.vmem %s19_s18, 128  ;;  %p501_p6 = scmp.lt.s32.totalorder %s19_s18, %s19_s18 }
   0xe   :  { %p497_p5 = scmp.ne.s32.totalorder %s19_s18, %s496_s22  ;;  %p502_p7 = scmp.lt.s32.totalorder %s496_s22, %s496_s22 }
  0x10   :  { %p503_p8 = por %p502_p7, %p501_p6 }
  0x12   :  { %p504_p9 = pnand %p503_p8, %p497_p5 }
  0x14   :  { %507 = shalt.err (!%p504_p9)
}
  0x15   :  { %21 = dma.hbm_to_vmem [thread:$0]  %s636_s0, 128, %s19_s18, [#allocation5]  }
  0x16   :  { %s556_s25 = smov [#allocation8]   ;;  %s557_s27 = smov [#allocation9]  }
  0x17   :  { %s38_s26 = sshll.u32 %s556_s25, 4  ;;  %s48_s28 = sshll.u32 %s557_s27, 4  ;;  %s39_s26 = int_to_ptr.vmem [resolvable:$true] %s38_s26  ;;  %s49_s28 = int_to_ptr.vmem [resolvable:$true] %s48_s28 }
  0x18   :  { %s516_s29 = scalar_lea.vmem %s39_s26, 128  ;;  %p521_p11 = scmp.lt.s32.totalorder %s39_s26, %s39_s26 }
  0x19   :  { %p517_p10 = scmp.ne.s32.totalorder %s39_s26, %s516_s29  ;;  %p522_p12 = scmp.lt.s32.totalorder %s516_s29, %s516_s29 }
  0x1b   :  { %p523_p13 = por %p522_p12, %p521_p11 }
  0x1d   :  { %p524_p0 = pnand %p523_p13, %p517_p10 }
  0x1f   :  { %527 = shalt.err (!%p524_p0)
}
  0x20   :  { %41 = dma.hbm_to_vmem [thread:$0]  %s638_s2, 128, %s39_s26, [#allocation7]  }
  0x21   :  { %s536_s5 = scalar_lea.vmem %s49_s28, 128  ;;  %p541_p2 = scmp.lt.s32.totalorder %s49_s28, %s49_s28 }
  0x22   :  { %p537_p1 = scmp.ne.s32.totalorder %s49_s28, %s536_s5  ;;  %p542_p3 = scmp.lt.s32.totalorder %s536_s5, %s536_s5 }
  0x24   :  { %p543_p4 = por %p542_p3, %p541_p2 }
  0x26   :  { %p544_p5 = pnand %p543_p4, %p537_p1 }
  0x28   :  { %547 = shalt.err (!%p544_p5)
}
  0x29   :  { %51 = dma.hbm_to_vmem [thread:$0]  %s639_s3, 128, %s49_s28, [#allocation10]  }
  0x2a   :  { %548 = dma.done.wait [#allocation5], 128  }
  0x2b   :  { %549 = vsyncadd [#allocation5], 4294967168 }
  0x2c   :  { %550 = dma.done.wait [#allocation7], 256  }
  0x2d   :  { %551 = vsyncadd [#allocation7], 4294967040 }
  0x2e   :  { %552 = dma.done.wait [#allocation10], 128  }
  0x2f   :  { %553 = vsyncadd [#allocation10], 4294967168  ;;  %vm72_vm0 = vcmask 261120   ;;  %v93_v0 = vld [vmem:[#allocation8] sm:$0xff]  ;;  %v179_v1 = vld [vmem:[#allocation9] sm:$0xff]  ;;  %v258_v10 = vlaneseq  ;;  %vm289_vm2 = vcmask 64512  }
  0x30   :  { %v68_v2 = vld [vmem:[#allocation4] sm:$0xff]  ;;  %430 = vmatprep.subr.msk.mxu0 %vm72_vm0, %v93_v0  ;;  %435 = vmatprep.subr.msk.mxu1 %vm72_vm0, %v179_v1  ;;  %v69_v4 = vld [vmem:[#allocation6] sm:$0xff]  ;;  %s558_s2 = smov 2   ;;  %v559_v25 = vmov 0   ;;  %vm84_vm3 = vcmask 7168   ;;  %v560_v28 = vmov 0.0  }
  0x31   :  { %v70_v3 = vmul.f32 2.0, %v68_v2  ;;  %431 = vmatpush3.xpose.msk.msra.mxu0 %vm72_vm0, %v93_v0  ;;  %436 = vmatpush3.xpose.msk.msra.mxu1 %vm72_vm0, %v179_v1  ;;  %v71_v5 = vmul.f32 2.0, %v69_v4  ;;  %v75_v6 = vmul.f32 %v69_v4, %v68_v2  ;;  %v259_v11 = vshrl.u32 %v258_v10, 7  ;;  %s561_s3 = smov 127   ;;  %s562_s7 = smov 1  }
  0x32   :  { %v262_v12 = vand.u32 127, %v258_v10  ;;  %451 = vset.pattern.permute.xlu1 %v559_v25  ;;  %450 = vset.pattern.permute.xlu0 %v559_v25  ;;  %v85_v29 = vsel %vm84_vm3, -inf, %v560_v28  ;;  %vm86_vm4 = vcmask 15360   ;;  %vm88_vm5 = vcmask 23552   ;;  %s563_s8 = smov 126  }
  0x33   :  { %73 = vst.msk [vmem:[#allocation2] sm:$0xff] %vm72_vm0, %v70_v3  ;;  %74 = vst.msk [vmem:[#allocation2 + $0x8] sm:$0xff] %vm72_vm0, %v71_v5  ;;  %v76_v7 = vsel %vm72_vm0, %v75_v6, 0.0  ;;  %vm371_vm6 = vcmask 15368  }
  0x34   :  { %77 = vadd.xlane.f32.xlu0 %v76_v7  ;;  %vm275_vm1 = vcmp.eq.s32.totalorder %v259_v11, %v262_v12 }
  0x3a   :  { %v91_v8 = vld [vmem:[#allocation2] sm:$0xff]  ;;  %v92_v9 = vld [vmem:[#allocation2 + $0x8] sm:$0xff] }
  0x3b   :  { %432 = vmatprep.mubr.msk.f32.mxu0 %vm72_vm0, %v91_v8  ;;  %437 = vmatprep.mubr.msk.f32.mxu1 %vm72_vm0, %v91_v8 }
  0x3c   :  { %433 = vmatmul.mubr.msk.f32.vlgmr.msra.gmra.mxu0 %vm72_vm0, %v92_v9  ;;  %438 = vmatmul.mubr.msk.f32.vlgmr.msra.gmra.mxu1 %vm72_vm0, %v92_v9 }
  0xbd   :  { %v78_v23 = vpop.xlane.xlu0 %77 }
  0xbe   :  { %v79_v24 = vmul.f32 2.0, %v78_v23 }
  0xfc   :  { %v434_v13 = vpop.f32.mrf.mxu0  ;;  %v439_v14 = vpop.f32.mrf.mxu1 }
  0xfd   :  { %v286_v15 = vsel %vm275_vm1, -1e+09, %v439_v14  ;;  %v293_v16 = vsel %vm289_vm2, %v434_v13, -inf }
  0xfe   :  { %v249_v17 = vpop.f32.mrf.mxu1  ;;  %294 = vmax.xlane.f32.xlu0 %v293_v16  ;;  %v299_v18 = vsel %vm289_vm2, %v286_v15, -inf  ;;  %v170_v19 = vpop.f32.mrf.mxu0 }
  0xff   :  { %300 = vmax.xlane.f32.xlu1 %v299_v18  ;;  %v279_v20 = vsel %vm275_vm1, -1e+09, %v170_v19  ;;  %v296_v21 = vsel %vm289_vm2, %v249_v17, -inf }
 0x100   :  { %v290_v22 = vsel %vm289_vm2, %v279_v20, -inf }
 0x102   :  { %297 = vmax.xlane.f32.xlu0 %v296_v21 }
 0x106   :  { %291 = vmax.xlane.f32.xlu0 %v290_v22 }
 0x110   :  { %81 = vrot.lane.b32.xlu1 %v79_v24, %s558_s2 }
 0x187   :  { %v295_v26 = vpop.xlane.xlu0 %294 }
 0x188   :  { %v301_v27 = vpop.xlane.xlu1 %300 }
 0x189   :  { %v303_v34 = vmax.f32 %v295_v26, %v301_v27 }
 0x18b   :  { %v298_v30 = vpop.xlane.xlu0 %297 }
 0x18c   :  { %v82_v31 = vpop.permute.xlu1 %81 }
 0x18d   :  { %v87_v32 = vsel %vm86_vm4, %v85_v29, %v82_v31 }
 0x18e   :  { %89 = vst.msk [vmem:[#allocation3] sm:$0xff] %vm88_vm5, %v87_v32  ;;  %90 = vst.msk [vmem:[#allocation3 + $0x8] sm:$0xff] %vm88_vm5, %v87_v32 }
 0x18f   :  { %v292_v33 = vpop.xlane.xlu0 %291 }
 0x190   :  { %v302_v35 = vmax.f32 %v292_v33, %v298_v30 }
 0x195   :  { %v287_v36 = vld [vmem:[#allocation3] sm:$0xff]  ;;  %v288_v37 = vld [vmem:[#allocation3 + $0x8] sm:$0xff] }
 0x196   :  { %v304_v38 = vmax.f32 %v287_v36, %v302_v35  ;;  %v305_v39 = vmax.f32 %v288_v37, %v303_v34 }
 0x198   :  { %361 = vst.msk [vmem:[#allocation3] sm:$0xff] %vm84_vm3, %v304_v38  ;;  %329 = vperm.xlu0 %450, %v305_v39   ;;  %362 = vst.msk [vmem:[#allocation3 + $0x8] sm:$0xff] %vm84_vm3, %v305_v39  ;;  %324 = vperm.xlu1 %451, %v304_v38   ;;  %v307_v58 = vsub.f32 %v288_v37, %v305_v39  ;;  %v306_v3 = vsub.f32 %v287_v36, %v304_v38 }
 0x19a   :  { %v310_v59 = vmul.f32 1.442695, %v307_v58  ;;  %v308_v4 = vmul.f32 1.442695, %v306_v3 }
 0x213   :  { %v325_v40 = vpop.permute.xlu1 %324  ;;  %v330_v41 = vpop.permute.xlu0 %329 }
 0x214   :  { %v333_v42 = vsub.f32 %v434_v13, %v330_v41  ;;  %v347_v43 = vsub.f32 %v286_v15, %v330_v41  ;;  %v346_v44 = vsub.f32 %v249_v17, %v325_v40  ;;  %v332_v54 = vsub.f32 %v279_v20, %v325_v40 }
 0x216   :  { %v336_v45 = vmul.f32 1.442695, %v333_v42  ;;  %v350_v46 = vmul.f32 1.442695, %v347_v43  ;;  %v348_v47 = vmul.f32 1.442695, %v346_v44 }
 0x217   :  { %v334_v55 = vmul.f32 1.442695, %v332_v54 }
 0x218   :  { %452 = vpow2.f32 %v336_v45 }
 0x219   :  { %454 = vpow2.f32 %v350_v46 }
 0x21a   :  { %456 = vpow2.f32 %v348_v47 }
 0x21b   :  { %458 = vpow2.f32 %v334_v55 }
 0x21c   :  { %460 = vpow2.f32 %v310_v59 }
 0x21d   :  { %462 = vpow2.f32 %v308_v4 }
 0x225   :  { %v453_v48 = vpop.eup %452 }
 0x226   :  { %v455_v49 = vpop.eup %454  ;;  %v341_v50 = vsel %vm289_vm2, %v453_v48, 0.0 }
 0x227   :  { %v355_v51 = vsel %vm289_vm2, %v455_v49, 0.0  ;;  %342 = vadd.xlane.f32.xlu1 %v341_v50  ;;  %v457_v52 = vpop.eup %456 }
 0x228   :  { %356 = vadd.xlane.f32.xlu0 %v355_v51  ;;  %v352_v53 = vsel %vm289_vm2, %v457_v52, 0.0  ;;  %v459_v56 = vpop.eup %458 }
 0x229   :  { %v338_v57 = vsel %vm289_vm2, %v459_v56, 0.0  ;;  %v461_v61 = vpop.eup %460 }
 0x22a   :  { %v463_v7 = vpop.eup %462 }
 0x22c   :  { %353 = vadd.xlane.f32.xlu0 %v352_v53 }
 0x238   :  { %316 = vrot.lane.b32.xlu1 %v288_v37, %s561_s3 }
 0x242   :  { %314 = vrot.lane.b32.xlu0 %v287_v36, %s561_s3 }
 0x25c   :  { %339 = vadd.xlane.f32.xlu1 %v338_v57 }
 0x2b0   :  { %v343_v60 = vpop.xlane.xlu1 %342 }
 0x2b1   :  { %v357_v1 = vpop.xlane.xlu0 %356 }
 0x2b4   :  { %v317_v62 = vpop.permute.xlu1 %316 }
 0x2b5   :  { %v321_v63 = vmul.f32 %v461_v61, %v317_v62  ;;  %v354_v5 = vpop.xlane.xlu0 %353 }
 0x2b7   :  { %v345_v0 = vadd.f32 %v343_v60, %v321_v63 }
 0x2b9   :  { %v359_v2 = vadd.f32 %v357_v1, %v345_v0  ;;  %v315_v6 = vpop.permute.xlu0 %314 }
 0x2ba   :  { %v320_v8 = vmul.f32 %v463_v7, %v315_v6 }
 0x2bb   :  { %367 = vrot.lane.b32.xlu1 %v359_v2, %s562_s7 }
 0x2e5   :  { %v340_v9 = vpop.xlane.xlu1 %339 }
 0x2e6   :  { %v344_v10 = vadd.f32 %v340_v9, %v320_v8 }
 0x2e8   :  { %v358_v11 = vadd.f32 %v354_v5, %v344_v10 }
 0x2ea   :  { %365 = vrot.lane.b32.xlu0 %v358_v11, %s562_s7 }
 0x32d   :  { %v368_v12 = vpop.permute.xlu1 %367 }
 0x32e   :  { %373 = vst.msk [vmem:[#allocation3 + $0x8] sm:$0xff] %vm371_vm6, %v368_v12 }
 0x335   :  { %v378_v13 = vld [vmem:[#allocation3 + $0x8] sm:$0xff] }
 0x336   :  { %464 = vlog2.f32 %v378_v13 }
 0x343   :  { %v465_v14 = vpop.eup %464 }
 0x344   :  { %v382_v15 = vmul.f32 0.6931472, %v465_v14 }
 0x346   :  { %387 = vrot.lane.b32.xlu0 %v382_v15, %s561_s3 }
 0x34a   :  { %397 = vrot.lane.b32.xlu0 %v378_v13, %s563_s8 }
 0x35c   :  { %v366_v16 = vpop.permute.xlu0 %365 }
 0x35d   :  { %372 = vst.msk [vmem:[#allocation3] sm:$0xff] %vm371_vm6, %v366_v16 }
 0x364   :  { %v377_v17 = vld [vmem:[#allocation3] sm:$0xff] }
 0x365   :  { %395 = vrot.lane.b32.xlu1 %v377_v17, %s563_s8  ;;  %466 = vlog2.f32 %v377_v17 }
 0x372   :  { %v467_v18 = vpop.eup %466 }
 0x373   :  { %v380_v19 = vmul.f32 0.6931472, %v467_v18 }
 0x375   :  { %385 = vrot.lane.b32.xlu0 %v380_v19, %s561_s3 }
 0x3b8   :  { %v388_v20 = vpop.permute.xlu0 %387 }
 0x3b9   :  { %v392_v21 = vadd.f32 %v388_v20, %v378_v13 }
 0x3bc   :  { %v398_v22 = vpop.permute.xlu0 %397 }
 0x3bd   :  { %v402_v23 = vsub.f32 %v392_v21, %v398_v22 }
 0x3bf   :  { %404 = vrot.lane.b32.xlu0 %v402_v23, %s562_s7 }
 0x3d7   :  { %v396_v26 = vpop.permute.xlu1 %395 }
 0x3e7   :  { %v386_v24 = vpop.permute.xlu0 %385 }
 0x3e8   :  { %v391_v25 = vadd.f32 %v386_v24, %v377_v17 }
 0x3ea   :  { %v401_v27 = vsub.f32 %v391_v25, %v396_v26 }
 0x431   :  { %v405_v28 = vpop.permute.xlu0 %404 }
 0x432   :  { %v407_v29 = vsel %vm84_vm3, %v401_v27, %v405_v28 }
 0x433   :  { %409 = vst.msk [vmem:[%s640_s4] sm:$0xff] %vm86_vm4, %v407_v29 }
 0x434   :  { %414 = vsyncpa [#allocation5], 1 }
 0x435   :  { %415 = vsyncpa [#allocation7], 1 }
 0x436   :  { %416 = vsyncpa [#allocation10], 1 }

</bundles_post_ra>
